<compile_context>
chip_gen: v7x
topology: tpu7x:2x2x1
jax: 0.10.0
libtpu: 0.0.40
codegen_flags: <defaults>
</compile_context>

<pallas_src>
import functools

import jax
import jax.numpy as jnp
from jax import lax
from jax.experimental import pallas as pl
from jax.experimental.pallas import tpu as pltpu


def _round_up(x, m):
    return (x + m - 1) // m * m


def _choose_tiling(B, cap=2048):
    """Pad B to a multiple of 128 and pick tile_b as a divisor of B_pad.

    Prefers >= 2 grid steps when the batch allows it (v7x megacore sharding),
    and never pads beyond the next multiple of 128 (no full-tile padding).
    """
    B_pad = _round_up(max(B, 1), 128)
    n = B_pad // 128
    cap_units = max(1, cap // 128)
    divisors = [d for d in range(1, n + 1) if n % d == 0 and d <= cap_units]
    multi = [d for d in divisors if n // d >= 2]
    d = max(multi) if multi else max(divisors)
    return B_pad, 128 * d


# -----------------------------------------------------------------------------
# Kernel
# -----------------------------------------------------------------------------
def mlp_kernel(x_ref,
               w1t_ref, b1_ref,
               w2t_ref, b2_ref,
               wfr_ref, bf_ref,
               out_ref):
    """One batch tile of the MLP forward, batch kept on the lane axis.

    hidden layer i : h_t = relu(Wi'^T @ h_prev_t + bi')    (BN folded; Dropout = id in eval)
    final layer    : z   = wf_row @ h2_t + bf              -> (1, tile_b), lane-dense
    output         : sigmoid(z)
    """
    x = x_ref[...]                                          # (tile_b, F), f32

    # ---- hidden layer 1: (H1, F) x (tile_b, F)^T -> (H1, tile_b)
    h = lax.dot_general(
        w1t_ref[...], x,
        dimension_numbers=(((1,), (1,)), ((), ())),
        preferred_element_type=jnp.float32,
    )
    h = jnp.maximum(h + b1_ref[...], 0.0)                   # bias (H1,1) lane-broadcast

    # ---- hidden layer 2: (H2, H1) @ (H1, tile_b) -> (H2, tile_b)
    h = jnp.dot(w2t_ref[...], h, preferred_element_type=jnp.float32)
    h = jnp.maximum(h + b2_ref[...], 0.0)

    # ---- final layer, single logit column: (1, H2) @ (H2, tile_b) -> (1, tile_b)
    z = jnp.dot(wfr_ref[...], h, preferred_element_type=jnp.float32) + bf_ref[...]

    # exact sigmoid (cost on a (1, tile_b) tile is negligible; exp runs on the EUP)
    p = 1.0 / (1.0 + jnp.exp(-z))
    out_ref[...] = p.reshape(out_ref.shape).astype(out_ref.dtype)


# -----------------------------------------------------------------------------
# Wrapper
# -----------------------------------------------------------------------------
def _xla_forward(x, p):
    """Plain-XLA fallback for tiny batches (same folded-weight math)."""
    h = jnp.maximum(x @ p["w1t"].T + p["b1"].T, 0.0)
    h = jnp.maximum(h @ p["w2t"].T + p["b2"].T, 0.0)
    z = h @ p["wf_row"].T + p["bf"]
    return 1.0 / (1.0 + jnp.exp(-z))


@functools.partial(jax.jit,
                   static_argnames=("tile_b_cap", "small_batch_xla", "force_kernel"))
def neural_net_forward(x, inf_params, *,
                       tile_b_cap=2048, small_batch_xla=256, force_kernel=False):
    """Runs the Pallas kernel over a batch-tiled grid. Returns (B, 1) probabilities."""
    B, F = x.shape

    # Small-batch fast path: the fixed pallas_call overhead exceeds the work.
    if (not force_kernel) and B < small_batch_xla:
        return _xla_forward(x, inf_params)

    B_pad, tile_b = _choose_tiling(B, cap=tile_b_cap)
    num_tiles = B_pad // tile_b
    if B_pad != B:
        x = jnp.pad(x, ((0, B_pad - B), (0, 0)))

    w1t, b1 = inf_params["w1t"], inf_params["b1"]
    w2t, b2 = inf_params["w2t"], inf_params["b2"]
    wf_row, bf = inf_params["wf_row"], inf_params["bf"]

    def resident_spec(arr):
        # full-array block, constant index_map -> stays in VMEM across the grid.
        return pl.BlockSpec(arr.shape, lambda i, _nd=arr.ndim: (0,) * _nd)

    H1, H2 = w1t.shape[0], w2t.shape[0]
    cost = pl.CostEstimate(
        flops=2 * B_pad * (F * H1 + H1 * H2 + H2),
        transcendentals=B_pad,
        bytes_accessed=int(
            B_pad * F * 4
            + (w1t.size + b1.size + w2t.size + b2.size + wf_row.size + bf.size) * 4
            + B_pad * 4),
    )

    grid_spec = pltpu.PrefetchScalarGridSpec(
        num_scalar_prefetch=0,
        grid=(num_tiles,),
        in_specs=[
            pl.BlockSpec((tile_b, F), lambda i: (i, 0)),   # x: batch-tiled
            resident_spec(w1t), resident_spec(b1),
            resident_spec(w2t), resident_spec(b2),
            resident_spec(wf_row), resident_spec(bf),
        ],
        out_specs=pl.BlockSpec((1, 1, tile_b), lambda i: (i, 0, 0)),
    )

    out = pl.pallas_call(
        mlp_kernel,
        out_shape=jax.ShapeDtypeStruct((num_tiles, 1, tile_b), jnp.float32),
        grid_spec=grid_spec,
        cost_estimate=cost,
        compiler_params=pltpu.CompilerParams(
            dimension_semantics=("parallel",),   # v7x: shard batch tiles across 2 TCs
        ),
    )(x, w1t, b1, w2t, b2, wf_row, bf)

    # (num_tiles, 1, tile_b) lane-dense slab -> (B, 1) column, drop padded rows.
    return out.reshape(B_pad, 1)[:B]


# -----------------------------------------------------------------------------
# Parameters
# -----------------------------------------------------------------------------
def make_params(key, input_size, hidden_layers):
    """Deterministic synthetic parameters matching the PyTorch module's shapes.

    BatchNorm1d (eval) is represented as a per-feature affine:
        scale = gamma / sqrt(running_var + eps)
        shift = beta  - running_mean * scale
    """
    eps = 1e-5
    params = {}
    sizes = [input_size] + list(hidden_layers)
    keys = jax.random.split(key, 16)
    ki = 0

    for li in range(len(hidden_layers)):
        fan_in, fan_out = sizes[li], sizes[li + 1]
        w = jax.random.normal(keys[ki], (fan_in, fan_out), jnp.float32) * 0.1; ki += 1
        b = jax.random.normal(keys[ki], (1, fan_out), jnp.float32) * 0.01;     ki += 1
        gamma = jnp.ones((1, fan_out), jnp.float32)
        beta = jnp.zeros((1, fan_out), jnp.float32)
        running_mean = jax.random.normal(keys[ki], (1, fan_out), jnp.float32) * 0.05; ki += 1
        running_var = jnp.ones((1, fan_out), jnp.float32)
        scale = gamma / jnp.sqrt(running_var + eps)
        shift = beta - running_mean * scale
        params[f"w{li+1}"] = w
        params[f"b{li+1}"] = b
        params[f"s{li+1}"] = scale
        params[f"t{li+1}"] = shift

    fan_in = sizes[-1]
    params["wf"] = jax.random.normal(keys[ki], (fan_in, 2), jnp.float32) * 0.1; ki += 1
    params["bf"] = jax.random.normal(keys[ki], (1, 2), jnp.float32) * 0.01;     ki += 1
    return params


def prepare_inference_params(params):
    """Host-side prep: fold eval-mode BN into the Linear weights/bias, transpose
    weights to (H_out, H_in) / biases to (H_out, 1) for the lane-dense kernel,
    and slice the final layer to the single logit column used by the forward."""
    out = {}
    for li in (1, 2):
        w, b = params[f"w{li}"], params[f"b{li}"]       # (fan_in, fan_out), (1, fan_out)
        s, t = params[f"s{li}"], params[f"t{li}"]
        w_fold = w * s                                  # scale output columns
        b_fold = b * s + t
        out[f"w{li}t"] = w_fold.T.astype(jnp.float32)   # (fan_out, fan_in)
        out[f"b{li}"] = b_fold.T.astype(jnp.float32)    # (fan_out, 1)
    out["wf_row"] = params["wf"][:, 1:2].T.astype(jnp.float32)   # (1, H_last)
    out["bf"] = params["bf"][:, 1:2].astype(jnp.float32)         # (1, 1)
    return out


# -----------------------------------------------------------------------------
# Pure-JAX reference (unfused — mirrors the PyTorch module)
# -----------------------------------------------------------------------------
def reference_forward(x, params):
    h = x @ params["w1"] + params["b1"]
    h = jnp.maximum(h * params["s1"] + params["t1"], 0.0)
    h = h @ params["w2"] + params["b2"]
    h = jnp.maximum(h * params["s2"] + params["t2"], 0.0)
    logits = h @ params["wf"] + params["bf"]
    return jax.nn.sigmoid(logits[:, 1:2])


if __name__ == "__main__":
    key = jax.random.PRNGKey(0)
    k_x, k_x2, k_p = jax.random.split(key, 3)

    batch = 8
    input_size = 16
    hidden_layers = [32, 32]
    # dropout_rates = [0.1, 0.1]  # eval mode => identity, not needed in kernel

    params = make_params(k_p, input_size, hidden_layers)
    inf_params = prepare_inference_params(params)

    # --- small batch: force the Pallas kernel path (single 128-row tile) ---
    x = jax.random.normal(k_x, (batch, input_size), jnp.float32)
    out = jax.block_until_ready(neural_net_forward(x, inf_params, force_kernel=True))
    ref = reference_forward(x, params)
    assert out.shape == (batch, 1), out.shape
    assert jnp.allclose(out, ref, atol=1e-2, rtol=1e-2), (out, ref)

    # --- larger, non-multiple-of-128 batch: multi-tile grid (2 x 256 rows) ---
    batch2 = 389
    x2 = jax.random.normal(k_x2, (batch2, input_size), jnp.float32)
    out2 = jax.block_until_ready(neural_net_forward(x2, inf_params))
    ref2 = reference_forward(x2, params)
    assert out2.shape == (batch2, 1), out2.shape
    assert jnp.allclose(out2, ref2, atol=1e-2, rtol=1e-2)

    print("KERNEL_OK")
</pallas_src>

<mosaic_0001>
module attributes {stable_mosaic.version = 11 : i64} {
  func.func @mlp_kernel(%arg0: i32, %arg1: memref<128x16xf32, #tpu.memory_space<vmem>>, %arg2: memref<32x16xf32, #tpu.memory_space<vmem>>, %arg3: memref<32x1xf32, #tpu.memory_space<vmem>>, %arg4: memref<32x32xf32, #tpu.memory_space<vmem>>, %arg5: memref<32x1xf32, #tpu.memory_space<vmem>>, %arg6: memref<1x32xf32, #tpu.memory_space<vmem>>, %arg7: memref<1x1xf32, #tpu.memory_space<vmem>>, %arg8: memref<1x1x128xf32, #tpu.memory_space<vmem>>) attributes {dimension_semantics = [#tpu.dimension_semantics<parallel>], iteration_bounds = array<i64: 1>, scalar_prefetch = 0 : i64, scratch_operands = 0 : i64, tpu.core_type = #tpu.core_type<tc>, window_params = [{transform_indices = @transform_0, window_bounds = array<i64: 128, 16>}, {pipeline_mode = #tpu.pipeline_mode<synchronous>, transform_indices = @transform_1, window_bounds = array<i64: 32, 16>}, {pipeline_mode = #tpu.pipeline_mode<synchronous>, transform_indices = @transform_2, window_bounds = array<i64: 32, 1>}, {pipeline_mode = #tpu.pipeline_mode<synchronous>, transform_indices = @transform_3, window_bounds = array<i64: 32, 32>}, {pipeline_mode = #tpu.pipeline_mode<synchronous>, transform_indices = @transform_4, window_bounds = array<i64: 32, 1>}, {pipeline_mode = #tpu.pipeline_mode<synchronous>, transform_indices = @transform_5, window_bounds = array<i64: 1, 32>}, {pipeline_mode = #tpu.pipeline_mode<synchronous>, transform_indices = @transform_6, window_bounds = array<i64: 1, 1>}, {transform_indices = @transform_7, window_bounds = array<i64: 1, 1, 128>}]} {
    %c0 = arith.constant 0 : index
    %c0_0 = arith.constant 0 : index
    %0 = vector.load %arg1[%c0, %c0_0] : memref<128x16xf32, #tpu.memory_space<vmem>>, vector<128x16xf32>
    %c0_1 = arith.constant 0 : index
    %c0_2 = arith.constant 0 : index
    %1 = vector.load %arg2[%c0_1, %c0_2] : memref<32x16xf32, #tpu.memory_space<vmem>>, vector<32x16xf32>
    %cst = arith.constant dense<0.000000e+00> : vector<32x128xf32>
    %2 = tpu.matmul %1, %0, %cst {dimension_numbers = #tpu.dot_dimension_numbers<[1], [1], [0], [0], [0, 0, 1, 0], [], []>} : vector<32x16xf32>, vector<128x16xf32>, vector<32x128xf32> -> vector<32x128xf32>
    %c0_3 = arith.constant 0 : index
    %c0_4 = arith.constant 0 : index
    %3 = vector.load %arg3[%c0_3, %c0_4] : memref<32x1xf32, #tpu.memory_space<vmem>>, vector<32x1xf32>
    %4 = vector.broadcast %3 : vector<32x1xf32> to vector<32x128xf32>
    %5 = arith.addf %2, %4 : vector<32x128xf32>
    %cst_5 = arith.constant 0.000000e+00 : f32
    %6 = vector.broadcast %cst_5 : f32 to vector<32x128xf32>
    %7 = arith.maximumf %5, %6 : vector<32x128xf32>
    %c0_6 = arith.constant 0 : index
    %c0_7 = arith.constant 0 : index
    %8 = vector.load %arg4[%c0_6, %c0_7] : memref<32x32xf32, #tpu.memory_space<vmem>>, vector<32x32xf32>
    %cst_8 = arith.constant dense<0.000000e+00> : vector<32x128xf32>
    %9 = tpu.matmul %8, %7, %cst_8 {dimension_numbers = #tpu.dot_dimension_numbers<[1], [0], [0], [1], [0, 0, 1, 1], [], []>} : vector<32x32xf32>, vector<32x128xf32>, vector<32x128xf32> -> vector<32x128xf32>
    %c0_9 = arith.constant 0 : index
    %c0_10 = arith.constant 0 : index
    %10 = vector.load %arg5[%c0_9, %c0_10] : memref<32x1xf32, #tpu.memory_space<vmem>>, vector<32x1xf32>
    %11 = vector.broadcast %10 : vector<32x1xf32> to vector<32x128xf32>
    %12 = arith.addf %9, %11 : vector<32x128xf32>
    %cst_11 = arith.constant 0.000000e+00 : f32
    %13 = vector.broadcast %cst_11 : f32 to vector<32x128xf32>
    %14 = arith.maximumf %12, %13 : vector<32x128xf32>
    %c0_12 = arith.constant 0 : index
    %c0_13 = arith.constant 0 : index
    %15 = vector.load %arg6[%c0_12, %c0_13] : memref<1x32xf32, #tpu.memory_space<vmem>>, vector<1x32xf32>
    %cst_14 = arith.constant dense<0.000000e+00> : vector<1x128xf32>
    %16 = tpu.matmul %15, %14, %cst_14 {dimension_numbers = #tpu.dot_dimension_numbers<[1], [0], [0], [1], [0, 0, 1, 1], [], []>} : vector<1x32xf32>, vector<32x128xf32>, vector<1x128xf32> -> vector<1x128xf32>
    %c0_15 = arith.constant 0 : index
    %c0_16 = arith.constant 0 : index
    %17 = vector.load %arg7[%c0_15, %c0_16] : memref<1x1xf32, #tpu.memory_space<vmem>>, vector<1x1xf32>
    %18 = vector.broadcast %17 : vector<1x1xf32> to vector<1x128xf32>
    %19 = arith.addf %16, %18 : vector<1x128xf32>
    %cst_17 = arith.constant 0.000000e+00 : f32
    %20 = vector.broadcast %cst_17 : f32 to vector<1x128xf32>
    %21 = arith.subf %20, %19 : vector<1x128xf32>
    %22 = math.exp %21 : vector<1x128xf32>
    %cst_18 = arith.constant 1.000000e+00 : f32
    %23 = vector.broadcast %cst_18 : f32 to vector<1x128xf32>
    %24 = arith.addf %23, %22 : vector<1x128xf32>
    %cst_19 = arith.constant 1.000000e+00 : f32
    %25 = vector.broadcast %cst_19 : f32 to vector<1x128xf32>
    %26 = arith.divf %25, %24 : vector<1x128xf32>
    %27 = vector.shape_cast %26 : vector<1x128xf32> to vector<1x1x128xf32>
    %c0_20 = arith.constant 0 : index
    %c0_21 = arith.constant 0 : index
    %c0_22 = arith.constant 0 : index
    %28 = vector.load %arg8[%c0_20, %c0_21, %c0_22] : memref<1x1x128xf32, #tpu.memory_space<vmem>>, vector<1x1x128xf32>
    tpu.vector_store %arg8[%c0_20, %c0_21, %c0_22], %27 {strides = array<i32>} : memref<1x1x128xf32, #tpu.memory_space<vmem>>, vector<1x1x128xf32>,
    return
  }
  func.func @transform_0(%arg0: i32) -> (i32, i32) {
    %c0_i32 = arith.constant 0 : i32
    %c0_i32_0 = arith.constant 0 : i32
    return %arg0, %c0_i32 : i32, i32
  }
  func.func @transform_1(%arg0: i32) -> (i32, i32) {
    %c0_i32 = arith.constant 0 : i32
    %c0_i32_0 = arith.constant 0 : i32
    %c0_i32_1 = arith.constant 0 : i32
    return %c0_i32, %c0_i32_0 : i32, i32
  }
  func.func @transform_2(%arg0: i32) -> (i32, i32) {
    %c0_i32 = arith.constant 0 : i32
    %c0_i32_0 = arith.constant 0 : i32
    %c0_i32_1 = arith.constant 0 : i32
    return %c0_i32, %c0_i32_0 : i32, i32
  }
  func.func @transform_3(%arg0: i32) -> (i32, i32) {
    %c0_i32 = arith.constant 0 : i32
    %c0_i32_0 = arith.constant 0 : i32
    %c0_i32_1 = arith.constant 0 : i32
    return %c0_i32, %c0_i32_0 : i32, i32
  }
  func.func @transform_4(%arg0: i32) -> (i32, i32) {
    %c0_i32 = arith.constant 0 : i32
    %c0_i32_0 = arith.constant 0 : i32
    %c0_i32_1 = arith.constant 0 : i32
    return %c0_i32, %c0_i32_0 : i32, i32
  }
  func.func @transform_5(%arg0: i32) -> (i32, i32) {
    %c0_i32 = arith.constant 0 : i32
    %c0_i32_0 = arith.constant 0 : i32
    %c0_i32_1 = arith.constant 0 : i32
    return %c0_i32, %c0_i32_0 : i32, i32
  }
  func.func @transform_6(%arg0: i32) -> (i32, i32) {
    %c0_i32 = arith.constant 0 : i32
    %c0_i32_0 = arith.constant 0 : i32
    %c0_i32_1 = arith.constant 0 : i32
    return %c0_i32, %c0_i32_0 : i32, i32
  }
  func.func @transform_7(%arg0: i32) -> (i32, i32, i32) {
    %c0_i32 = arith.constant 0 : i32
    %c0_i32_0 = arith.constant 0 : i32
    %c0_i32_1 = arith.constant 0 : i32
    return %arg0, %c0_i32, %c0_i32_0 : i32, i32, i32
  }
}

</mosaic_0001>

<bundles_post_ra>
// kernel: neural_net_forward.1
= control target key start
LH: loop header
LB: loop body
LE: loop exit
PB: predicated region body
PF: predicated region fallthrough
CT: control target
= control target key end

     0   :  { %vm72_vm0 = vcmask 130048   ;;  %v640_v3 = vmov 0   ;;  %vm250_vm2 = vcmask 261120   ;;  %v641_v62 = vmov 0.0|0.0   ;;  %s836_s0 = inlined_call_operand.vmem [shape: f32[128,16], index: 0, kind: input, shape index: {}]   ;;  %s837_s6 = inlined_call_operand.<no memory space> [shape: f32[1,1], index: 6, kind: input, shape index: {}]   ;;  %s838_s1 = inlined_call_operand.vmem [shape: f32[32,16], index: 1, kind: input, shape index: {}]   ;;  %s839_s2 = inlined_call_operand.vmem [shape: f32[32,1], index: 2, kind: input, shape index: {}]   ;;  %s840_s4 = inlined_call_operand.vmem [shape: f32[32,1], index: 4, kind: input, shape index: {}]   ;;  %s841_s3 = inlined_call_operand.vmem [shape: f32[32,32], index: 3, kind: input, shape index: {}]   ;;  %s842_s5 = inlined_call_operand.vmem [shape: f32[1,32], index: 5, kind: input, shape index: {}]   ;;  %s843_s7 = inlined_call_operand.vmem [shape: f32[1,1,128], index: 7, kind: output, shape index: {}]  }
   0x1   :  { %v28_v0 = vld [vmem:[%s836_s0] sm:$0xff]  ;;  %v29_v1 = vld [vmem:[%s836_s0 + $0x8] sm:$0xff]  ;;  %vm692_vm1 = vmpackc.low %vm72_vm0, %vm72_vm0  ;;  %634 = vset.pattern.permute.xlu0 %v640_v3  ;;  %635 = vset.pattern.permute.xlu1 %v640_v3  ;;  %v12_v4 = vstv %s837_s6  ;;  %vm642_vm3 = vmmov 0   ;;  %v643_v63 = vmov 0.0  }
   0x2   :  { %v568_v5 = vpack.c.bf16 %v29_v1, %v28_v0  ;;  %v30_v6 = vld [vmem:[%s836_s0 + $0x10] sm:$0xff]  ;;  %v31_v7 = vld [vmem:[%s836_s0 + $0x18] sm:$0xff]  ;;  %13 = vst [vmem:[#allocation2] sm:$0x1] %v12_v4  ;;  %v44_v9 = vld [vmem:[%s838_s1] sm:$0xff] }
   0x3   :  { %v574_v8 = vpack.c.bf16 %v31_v7, %v30_v6  ;;  %v32_v10 = vld [vmem:[%s836_s0 + $0x20] sm:$0xff]  ;;  %v33_v11 = vld [vmem:[%s836_s0 + $0x28] sm:$0xff]  ;;  %537 = vmatprep.mubr.msk.f32.mxu0 %vm72_vm0, %v44_v9  ;;  %v50_v13 = vld [vmem:[%s839_s2 + $0x10] sm:$0xff] }
   0x4   :  { %570 = vmatprep.subr.msk.bf16.mxu0 %vm692_vm1, %v568_v5  ;;  %v48_v12 = vld [vmem:[%s839_s2] sm:$0xff]  ;;  %64 = vperm.xlu1 %635, %v50_v13   ;;  %v580_v14 = vpack.c.bf16 %v33_v11, %v32_v10  ;;  %v49_v15 = vld [vmem:[%s839_s2 + $0x8] sm:$0xff]  ;;  %v51_v16 = vld [vmem:[%s839_s2 + $0x18] sm:$0xff] }
   0x5   :  { %573 = vmatpush3.bf16.xpose.msk.msra.mxu0 %vm692_vm1, %v568_v5  ;;  %54 = vperm.xlu0 %634, %v48_v12   ;;  %v226_v17 = vld [vmem:[%s840_s4] sm:$0xff]  ;;  %v34_v18 = vld [vmem:[%s836_s0 + $0x30] sm:$0xff]  ;;  %v35_v19 = vld [vmem:[%s836_s0 + $0x38] sm:$0xff] }
   0x6   :  { %576 = vmatprep.subr.msk.bf16.mxu0 %vm692_vm1, %v574_v8  ;;  %v227_v20 = vld [vmem:[%s840_s4 + $0x8] sm:$0xff]  ;;  %v586_v21 = vpack.c.bf16 %v35_v19, %v34_v18  ;;  %v228_v22 = vld [vmem:[%s840_s4 + $0x10] sm:$0xff]  ;;  %v229_v23 = vld [vmem:[%s840_s4 + $0x18] sm:$0xff]  ;;  %v359_v19 = vlaneseq }
   0x7   :  { %v36_v25 = vld [vmem:[%s836_s0 + $0x40] sm:$0xff]  ;;  %v37_v26 = vld [vmem:[%s836_s0 + $0x48] sm:$0xff]  ;;  %v38_v28 = vld [vmem:[%s836_s0 + $0x50] sm:$0xff] }
   0x8   :  { %69 = vperm.xlu1 %635, %v51_v16   ;;  %v592_v27 = vpack.c.bf16 %v37_v26, %v36_v25  ;;  %v39_v29 = vld [vmem:[%s836_s0 + $0x58] sm:$0xff]  ;;  %v40_v31 = vld [vmem:[%s836_s0 + $0x60] sm:$0xff]  ;;  %v41_v32 = vld [vmem:[%s836_s0 + $0x68] sm:$0xff] }
   0x9   :  { %59 = vperm.xlu0 %634, %v49_v15   ;;  %v353_v24 = vld [vmem:[#allocation2] sm:$0x1]  ;;  %v598_v30 = vpack.c.bf16 %v39_v29, %v38_v28  ;;  %v604_v33 = vpack.c.bf16 %v41_v32, %v40_v31  ;;  %v42_v34 = vld [vmem:[%s836_s0 + $0x70] sm:$0xff]  ;;  %v43_v35 = vld [vmem:[%s836_s0 + $0x78] sm:$0xff] }
   0xa   :  { %v610_v36 = vpack.c.bf16 %v43_v35, %v42_v34  ;;  %v45_v37 = vld [vmem:[%s838_s1 + $0x8] sm:$0xff]  ;;  %v46_v38 = vld [vmem:[%s838_s1 + $0x10] sm:$0xff]  ;;  %v47_v39 = vld [vmem:[%s838_s1 + $0x18] sm:$0xff] }
   0xb   :  { %v222_v40 = vld [vmem:[%s841_s3] sm:$0xff]  ;;  %v223_v59 = vld [vmem:[%s841_s3 + $0x8] sm:$0xff]  ;;  %v224_v60 = vld [vmem:[%s841_s3 + $0x10] sm:$0xff] }
   0xc   :  { %237 = vperm.xlu1 %635, %v227_v20   ;;  %551 = vmatprep.mubr.msk.f32.mxu1 %vm250_vm2, %v222_v40  ;;  %v225_v61 = vld [vmem:[%s841_s3 + $0x18] sm:$0xff]  ;;  %v352_v18 = vld [vmem:[%s842_s5] sm:$0x1]  ;;  %v360_v20 = vshrl.u32 %v359_v19, 7 }
   0xd   :  { %579 = vmatpush3.bf16.xpose.msk.msra.mxu0 %vm692_vm1, %v574_v8  ;;  %232 = vperm.xlu0 %634, %v226_v17  }
   0xe   :  { %582 = vmatprep.subr.msk.bf16.mxu0 %vm692_vm1, %v580_v14 }
  0x10   :  { %247 = vperm.xlu1 %635, %v229_v23  }
  0x11   :  { %242 = vperm.xlu0 %634, %v228_v22  }
  0x15   :  { %585 = vmatpush3.bf16.xpose.msk.msra.mxu0 %vm692_vm1, %v580_v14  ;;  %356 = vperm.xlu0 %634, %v353_v24  }
  0x16   :  { %588 = vmatprep.subr.msk.bf16.mxu0 %vm692_vm1, %v586_v21 }
  0x1d   :  { %591 = vmatpush3.bf16.xpose.msk.msra.mxu0 %vm692_vm1, %v586_v21  ;;  %v361_v21 = vsub.s32 0, %v360_v20 }
  0x1e   :  { %594 = vmatprep.subr.msk.bf16.mxu0 %vm692_vm1, %v592_v27 }
  0x25   :  { %597 = vmatpush3.bf16.xpose.msk.msra.mxu0 %vm692_vm1, %v592_v27 }
  0x26   :  { %600 = vmatprep.subr.msk.bf16.mxu0 %vm692_vm1, %v598_v30 }
  0x2d   :  { %603 = vmatpush3.bf16.xpose.msk.msra.mxu0 %vm692_vm1, %v598_v30 }
  0x2e   :  { %606 = vmatprep.subr.msk.bf16.mxu0 %vm692_vm1, %v604_v33 }
  0x35   :  { %609 = vmatpush3.bf16.xpose.msk.msra.mxu0 %vm692_vm1, %v604_v33 }
  0x36   :  { %612 = vmatprep.subr.msk.bf16.mxu0 %vm692_vm1, %v610_v36 }
  0x3d   :  { %615 = vmatpush3.bf16.xpose.msk.msra.mxu0 %vm692_vm1, %v610_v36 }
  0x44   :  { %538 = vmatmul.mubr.msk.f32.vlgmr.msra.gmra.mrb[0].mxu0 %vm72_vm0, %v45_v37 }
  0x45   :  { %540 = vmatprep.mubr.msk.f32.mxu0 %vm72_vm0, %v46_v38 }
  0x48   :  { %541 = vmatmul.mubr.msk.f32.gmra.mrb[2].mxu0 %vm72_vm0, %v47_v39 }
  0x83   :  { %v65_v42 = vpop.permute.xlu1 %64 }
  0x84   :  { %v55_v41 = vpop.permute.xlu0 %54 }
  0x87   :  { %v70_v49 = vpop.permute.xlu1 %69 }
  0x88   :  { %v60_v43 = vpop.permute.xlu0 %59 }
  0x8b   :  { %v238_v0 = vpop.permute.xlu1 %237 }
  0x8c   :  { %v233_v1 = vpop.permute.xlu0 %232 }
  0x8f   :  { %v248_v7 = vpop.permute.xlu1 %247 }
  0x90   :  { %v243_v10 = vpop.permute.xlu0 %242 }
  0x94   :  { %v357_v22 = vpop.permute.xlu0 %356 }
  0x95   :  { %v362_v23 = vrot.slane %v357_v22, %v361_v21 }
 0x117   :  { %v539_v44 = vpop.f32.mrb[0].mxu0 }
 0x118   :  { %v205_v45 = vadd.f32 %v539_v44, %v60_v43  ;;  %v199_v46 = vpop.f32.mrb[1].mxu0 }
 0x119   :  { %v200_v47 = vadd.f32 %v199_v46, %v55_v41 }
 0x11a   :  { %v219_v48 = vmax.f32 %v205_v45, 0.0 }
 0x11b   :  { %v218_v50 = vmax.f32 %v200_v47, 0.0  ;;  %v542_v51 = vpop.f32.mrb[2].mxu0 }
 0x11c   :  { %v215_v52 = vadd.f32 %v542_v51, %v70_v49  ;;  %v209_v53 = vpop.f32.mrb[3].mxu0 }
 0x11d   :  { %v210_v54 = vadd.f32 %v209_v53, %v65_v42  ;;  %v616_v55 = vpack.c.bf16 %v219_v48, %v218_v50 }
 0x11e   :  { %v221_v56 = vmax.f32 %v215_v52, 0.0 }
 0x11f   :  { %v220_v57 = vmax.f32 %v210_v54, 0.0  ;;  %617 = vmatprep.subr.bf16.mxu1 %v616_v55 }
 0x120   :  { %619 = vmatpush3.bf16.msra.mxu1 %v616_v55 }
 0x121   :  { %v620_v58 = vpack.c.bf16 %v221_v56, %v220_v57 }
 0x123   :  { %621 = vmatprep.subr.bf16.mxu1 %v620_v58 }
 0x124   :  { %623 = vmatpush3.bf16.msra.mxu1 %v620_v58 }
 0x125   :  { %624 = vmatprep.subr.bf16.mxu1 %v641_v62 }
 0x127   :  { %552 = vmatmul.mubr.msk.f32.vlgmr.msra.gmra.mrb[0].mxu1 %vm250_vm2, %v223_v59 }
 0x128   :  { %554 = vmatprep.mubr.msk.f32.mxu1 %vm250_vm2, %v224_v60 }
 0x12b   :  { %555 = vmatmul.mubr.msk.f32.gmra.mrb[2].mxu1 %vm250_vm2, %v225_v61 }
 0x12c   :  { %565 = vmatprep.mubr.msk.f32.mxu1 %vm642_vm3, %v643_v63 }
 0x1fa   :  { %v553_v2 = vpop.f32.mrb[0].mxu1 }
 0x1fb   :  { %v335_v3 = vadd.f32 %v553_v2, %v238_v0  ;;  %v329_v4 = vpop.f32.mrb[1].mxu1 }
 0x1fc   :  { %v330_v5 = vadd.f32 %v329_v4, %v233_v1 }
 0x1fd   :  { %v349_v6 = vmax.f32 %v335_v3, 0.0 }
 0x1fe   :  { %v348_v8 = vmax.f32 %v330_v5, 0.0  ;;  %v556_v9 = vpop.f32.mrb[2].mxu1 }
 0x1ff   :  { %v345_v11 = vadd.f32 %v556_v9, %v248_v7  ;;  %v339_v12 = vpop.f32.mrb[3].mxu1 }
 0x200   :  { %v625_v13 = vpack.c.bf16 %v349_v6, %v348_v8  ;;  %v340_v14 = vadd.f32 %v339_v12, %v243_v10 }
 0x201   :  { %v351_v15 = vmax.f32 %v345_v11, 0.0 }
 0x202   :  { %v350_v16 = vmax.f32 %v340_v14, 0.0  ;;  %626 = vmatpush3.bf16.msra.mxu1 %v625_v13 }
 0x203   :  { %627 = vmatprep.subr.bf16.mxu1 %v641_v62 }
 0x204   :  { %v628_v17 = vpack.c.bf16 %v351_v15, %v350_v16 }
 0x206   :  { %629 = vmatpush3.bf16.msra.mxu1 %v628_v17 }
 0x209   :  { %566 = vmatmul.mubr.msk.f32.vlgmr.msra.gmra.mrb[4].mxu1 %vm250_vm2, %v352_v18 }
 0x2dc   :  { %v432_v24 = vpop.f32.mrb[4].mxu1 }
 0x2dd   :  { %v433_v25 = vadd.f32 %v432_v24, %v362_v23  ;;  %v567_v26 = vpop.f32.mrb[5].mxu1 }
 0x2df   :  { %v436_v27 = vsub.f32 0.0, %v433_v25 }
 0x2e1   :  { %v437_v28 = vmul.f32 1.442695, %v436_v27 }
 0x2e3   :  { %636 = vpow2.f32 %v437_v28 }
 0x2ed   :  { %v637_v29 = vpop.eup %636 }
 0x2ee   :  { %v439_v30 = vadd.f32 1.0, %v637_v29 }
 0x2f0   :  { %638 = vrcp.f32 %v439_v30 }
 0x2fa   :  { %v639_v31 = vpop.eup %638 }
 0x2fb   :  { %442 = vst [vmem:[%s843_s7] sm:$0x1] %v639_v31 }

</bundles_post_ra>
